<compile_context>
chip_gen: v6e
topology: v6e:2x2x1
jax: 0.10.0
libtpu: 0.0.40
codegen_flags: <defaults>
</compile_context>

<pallas_src>
import jax
import jax.numpy as jnp
import numpy as np
from jax import lax
from jax.experimental import pallas as pl
from jax.experimental.pallas import tpu as pltpu


# --------------------------------------------------------------------------------------
# Pallas kernel: one (tq, tk) tile of relu(fa^T @ ga)  -- the SR relation map.
# --------------------------------------------------------------------------------------
def sr_rel_kernel(fa_ref, ga_ref, sr_ref):
    # fa_ref: (1, Ca, tq), ga_ref: (1, Ca, tk)  -- lane-dense, contracted on the channel
    # (sublane) axis so the kernel is transpose-free.
    rel = lax.dot_general(fa_ref[0], ga_ref[0],
                          (((0,), (0,)), ((), ())),
                          preferred_element_type=jnp.float32)          # (tq, tk) f32
    sr_ref[0] = jnp.maximum(rel, 0.0).astype(sr_ref.dtype)


def _pick_tile(hw, prefs):
    for t in prefs:
        if t <= hw and hw % t == 0:
            return t
    return hw  # full-extent block (valid: equals the array dim)


def p_ra_forward(x, params, *, tq=None, tk=None, mxu_dtype=jnp.bfloat16):
    """P_RA_Module forward.  x: (B, C, H, W) float32 -> (B, 2*C + H*W, H, W)."""
    B, C, H, W = x.shape
    HW = H * W
    w1s, b1s, w2s, b2s, w1c, b1c, w2c, b2c = params

    f_chw = x.reshape(B, C, HW).astype(jnp.float32)          # single lane-dense layout

    # ---------------- SR operand preparation (wrapper-side, O(C^2*HW)) ----------------
    M = w1s.T @ w2s                                          # (C, C)
    c_vec = w1s.T @ b2s                                      # (C,)
    r_vec = w2s.T @ b1s                                      # (C,)
    s = jnp.dot(b1s, b2s)                                    # scalar
    ga_top = jnp.einsum('cd,bdp->bcp', M, f_chw) + c_vec[None, :, None]   # (B, C, HW)
    ga_bot = jnp.einsum('c,bcp->bp', r_vec, f_chw) + s                    # (B, HW)
    fa = jnp.concatenate([f_chw, jnp.ones((B, 1, HW), jnp.float32)], axis=1)
    ga = jnp.concatenate([ga_top, ga_bot[:, None, :]], axis=1)
    fa = fa.astype(mxu_dtype)                                # cast once (not per step)
    ga = ga.astype(mxu_dtype)
    Ca = C + 1

    # ---------------- tile selection + generation-aware VMEM budget -------------------
    if tq is None:
        tq = _pick_tile(HW, (1024, 512, 256, 128))
    if tk is None:
        tk = _pick_tile(HW, (1024, 512, 256, 128))
    assert HW % tq == 0 and HW % tk == 0

    itemsize = jnp.dtype(mxu_dtype).itemsize

    def est(q, k):
        return (2 * Ca * (q + k) * itemsize   # double-buffered fa / ga tiles
                + 2 * q * k * 4               # double-buffered sr output blocks (f32)
                + 2 * q * k * 4)              # Mosaic-internal f32 matmul + relu temps

    try:
        vmem_cap = int(pltpu.get_tpu_info().vmem_capacity_bytes)
    except Exception:                         # pragma: no cover - conservative fallback
        vmem_cap = 64 << 20                   # assume v7x-sized (tightest) VMEM
    budget = (vmem_cap * 3) // 4              # leave headroom for compiler temps

    while 2 * est(tq, tk) > budget:
        if tk >= tq and tk > 128 and tk % 2 == 0 and HW % (tk // 2) == 0:
            tk //= 2
        elif tq > 128 and tq % 2 == 0 and HW % (tq // 2) == 0:
            tq //= 2
        else:
            break
    nq, nk = HW // tq, HW // tk
    vmem_limit = int(min(max(2 * est(tq, tk), 32 << 20), budget))

    # ---------------- Pallas call: tiled relu(fa^T ga) --------------------------------
    # NOTE(v7x): B*nq should be even / balanced so both TensorCores get work; each
    # output block is written exactly once (no cross-k state), so core sharding is safe.
    sr_rel = pl.pallas_call(
        sr_rel_kernel,
        out_shape=jax.ShapeDtypeStruct((B, HW, HW), jnp.float32),
        grid_spec=pltpu.PrefetchScalarGridSpec(
            num_scalar_prefetch=0,
            grid=(B, nq, nk),
            in_specs=[
                pl.BlockSpec((1, Ca, tq), lambda b, q, k: (b, 0, q)),   # query-side tile
                pl.BlockSpec((1, Ca, tk), lambda b, q, k: (b, 0, k)),   # key-side tile
            ],
            out_specs=pl.BlockSpec((1, tq, tk), lambda b, q, k: (b, q, k)),
        ),
        compiler_params=pltpu.CompilerParams(
            dimension_semantics=("parallel", "parallel", "arbitrary"),
            vmem_limit_bytes=vmem_limit,
        ),
    )(fa, ga)

    # ---------------- CR branch: tiny, plain XLA (per perf review) --------------------
    d = jnp.mean(f_chw, axis=2)                              # (B, C)  GAP
    us_c = d @ w1c.T + b1c                                   # (B, C)
    vs_c = d @ w2c.T + b2c                                   # (B, C)
    rel_c = us_c[:, :, None] * vs_c[:, None, :]              # (B, C, C)
    p = jax.nn.softmax(rel_c, axis=1)                        # softmax over torch dim=1
    f_hwc = jnp.transpose(f_chw, (0, 2, 1))                  # (B, HW, C)
    rc = jnp.einsum('bpc,bcd->bpd', f_hwc, p).reshape(B, C, H, W)

    # ---------------- assembly, exactly mirroring the torch module --------------------
    rs = jnp.concatenate([x, sr_rel.reshape(B, HW, H, W)], axis=1)
    return jnp.concatenate([rs, rc], axis=1)                 # (B, 2*C + HW, H, W)


# --------------------------------------------------------------------------------------
# Pure-JAX reference mirroring the PyTorch module (for the correctness check).
# --------------------------------------------------------------------------------------
def reference(x, params):
    B, C, H, W = x.shape
    HW = H * W
    w1s, b1s, w2s, b2s, w1c, b1c, w2c, b2c = params
    # CR
    d = x.mean(axis=(2, 3))                                  # (B, C)
    us = d @ w1c.T + b1c
    vs = d @ w2c.T + b2c
    rel = us[:, :, None] * vs[:, None, :]                    # (B, C, C)
    rel = jax.nn.softmax(rel, axis=1)
    f = x.reshape(B, C, HW).transpose(0, 2, 1)               # (B, HW, C)
    rc = jnp.einsum('bpc,bcd->bpd', f, rel).reshape(B, C, H, W)
    # SR
    u2 = jnp.einsum('bchw,dc->bdhw', x, w1s) + b1s[None, :, None, None]
    v2 = jnp.einsum('bchw,dc->bdhw', x, w2s) + b2s[None, :, None, None]
    u2f = u2.reshape(B, C, HW).transpose(0, 2, 1)
    v2f = v2.reshape(B, C, HW)
    rel2 = jnp.einsum('bpc,bcq->bpq', u2f, v2f).reshape(B, HW, H, W)
    rel2 = jnp.maximum(rel2, 0.0)
    rs = jnp.concatenate([x, rel2], axis=1)
    return jnp.concatenate([rs, rc], axis=1)


if __name__ == "__main__":
    B, C, H, W = 2, 4, 16, 16
    key = jax.random.PRNGKey(0)
    kx, *kp = jax.random.split(key, 9)
    x = jax.random.normal(kx, (B, C, H, W), dtype=jnp.float32)

    # PyTorch Conv2d(C, C, 1): weight (C, C, 1, 1) -> (C, C), bias (C,)
    bound = 1.0 / (C ** 0.5)

    def u(k, shape):
        return jax.random.uniform(k, shape, jnp.float32, -bound, bound)

    w1s, b1s = u(kp[0], (C, C)), u(kp[1], (C,))   # SR conv1
    w2s, b2s = u(kp[2], (C, C)), u(kp[3], (C,))   # SR conv2
    w1c, b1c = u(kp[4], (C, C)), u(kp[5], (C,))   # CR conv1
    w2c, b2c = u(kp[6], (C, C)), u(kp[7], (C,))   # CR conv2
    params = (w1s, b1s, w2s, b2s, w1c, b1c, w2c, b2c)

    ref = jax.block_until_ready(reference(x, params))

    # Exact-math path (f32 MXU operands), forced 128x128 tiles -> exercises the
    # multi-tile (B, 2, 2) grid with tight tolerance.
    out_f32 = jax.block_until_ready(
        p_ra_forward(x, params, tq=128, tk=128, mxu_dtype=jnp.float32))
    assert out_f32.shape == (B, 2 * C + H * W, H, W), out_f32.shape
    np.testing.assert_allclose(np.asarray(out_f32), np.asarray(ref), rtol=2e-3, atol=2e-3)

    # Default fast path: bf16 MXU operands with f32 accumulation, auto tile sizes.
    out_bf16 = jax.block_until_ready(p_ra_forward(x, params))
    assert out_bf16.shape == (B, 2 * C + H * W, H, W), out_bf16.shape
    np.testing.assert_allclose(np.asarray(out_bf16), np.asarray(ref), rtol=5e-2, atol=5e-2)

    print("KERNEL_OK")
</pallas_src>

<mosaic_0001>
module attributes {stable_mosaic.version = 11 : i64} {
  func.func @sr_rel_kernel(%arg0: i32, %arg1: i32, %arg2: i32, %arg3: memref<1x5x128xf32, #tpu.memory_space<vmem>>, %arg4: memref<1x5x128xf32, #tpu.memory_space<vmem>>, %arg5: memref<1x128x128xf32, #tpu.memory_space<vmem>>) attributes {dimension_semantics = [#tpu.dimension_semantics<parallel>, #tpu.dimension_semantics<parallel>, #tpu.dimension_semantics<arbitrary>], iteration_bounds = array<i64: 2, 2, 2>, scalar_prefetch = 0 : i64, scratch_operands = 0 : i64, tpu.core_type = #tpu.core_type<tc>, window_params = [{transform_indices = @transform_0, window_bounds = array<i64: 1, 5, 128>}, {transform_indices = @transform_1, window_bounds = array<i64: 1, 5, 128>}, {transform_indices = @transform_2, window_bounds = array<i64: 1, 128, 128>}]} {
    %c0 = arith.constant 0 : index
    %c0_0 = arith.constant 0 : index
    %c0_1 = arith.constant 0 : index
    %0 = vector.load %arg3[%c0, %c0_0, %c0_1] : memref<1x5x128xf32, #tpu.memory_space<vmem>>, vector<1x5x128xf32>
    %1 = vector.shape_cast %0 : vector<1x5x128xf32> to vector<5x128xf32>
    %c0_2 = arith.constant 0 : index
    %c0_3 = arith.constant 0 : index
    %c0_4 = arith.constant 0 : index
    %2 = vector.load %arg4[%c0_2, %c0_3, %c0_4] : memref<1x5x128xf32, #tpu.memory_space<vmem>>, vector<1x5x128xf32>
    %3 = vector.shape_cast %2 : vector<1x5x128xf32> to vector<5x128xf32>
    %cst = arith.constant dense<0.000000e+00> : vector<128x128xf32>
    %4 = tpu.matmul %1, %3, %cst {dimension_numbers = #tpu.dot_dimension_numbers<[0], [0], [1], [1], [0, 1, 1, 1], [], []>} : vector<5x128xf32>, vector<5x128xf32>, vector<128x128xf32> -> vector<128x128xf32>
    %cst_5 = arith.constant 0.000000e+00 : f32
    %5 = vector.broadcast %cst_5 : f32 to vector<128x128xf32>
    %6 = arith.maximumf %4, %5 : vector<128x128xf32>
    %c0_6 = arith.constant 0 : index
    %c0_7 = arith.constant 0 : index
    %c0_8 = arith.constant 0 : index
    %7 = vector.load %arg5[%c0_6, %c0_7, %c0_8] : memref<1x128x128xf32, #tpu.memory_space<vmem>>, vector<1x128x128xf32>
    %8 = vector.shape_cast %7 : vector<1x128x128xf32> to vector<128x128xf32>
    %9 = vector.shape_cast %6 : vector<128x128xf32> to vector<1x128x128xf32>
    tpu.vector_store %arg5[%c0_6, %c0_7, %c0_8], %9 {strides = array<i32>} : memref<1x128x128xf32, #tpu.memory_space<vmem>>, vector<1x128x128xf32>,
    return
  }
  func.func @transform_0(%arg0: i32, %arg1: i32, %arg2: i32) -> (i32, i32, i32) {
    %c0_i32 = arith.constant 0 : i32
    %c0_i32_0 = arith.constant 0 : i32
    return %arg0, %c0_i32, %arg1 : i32, i32, i32
  }
  func.func @transform_1(%arg0: i32, %arg1: i32, %arg2: i32) -> (i32, i32, i32) {
    %c0_i32 = arith.constant 0 : i32
    %c0_i32_0 = arith.constant 0 : i32
    return %arg0, %c0_i32, %arg2 : i32, i32, i32
  }
  func.func @transform_2(%arg0: i32, %arg1: i32, %arg2: i32) -> (i32, i32, i32) {
    %c0_i32 = arith.constant 0 : i32
    return %arg0, %arg1, %arg2 : i32, i32, i32
  }
}

</mosaic_0001>

<bundles_post_ra>
// kernel: tpu_custom_call.1
= control target key start
LH: loop header
LB: loop body
LE: loop exit
PB: predicated region body
PF: predicated region fallthrough
CT: control target
= control target key end

     0   :  { %7 = vsyncpa [#allocation3], 0  ;;  %s1103_s0 = inlined_call_operand.vmem [shape: f32[2,5,256], index: 0, kind: input, shape index: {}]   ;;  %s1104_s1 = inlined_call_operand.vmem [shape: f32[2,5,256], index: 1, kind: input, shape index: {}]   ;;  %s1105_s2 = inlined_call_operand.hbm [shape: f32[2,256,256], index: 2, kind: output, shape index: {}]  }
   0x1   :  { %9 = vsyncpa [#allocation3 + $0x1], 0  ;;  %s897_s9 = smov 0   ;;  %s899_s10 = smov 0  }
   0x2   :  { %s901_s11 = smov 0   ;;  %s903_s12 = smov 0  }
   0x3   :  { %s905_s13 = smov 0   ;;  %s907_s14 = smov 0  }
   0x4   :  { %s909_s15 = smov 0   ;;  %s911_s16 = smov 0  }
   0x5   :  { %s913_s17 = smov 0   ;;  %s915_s18 = smov 0  }
   0x6 LB: > { %s597_s19 = sadd.s32 4294967295, %s876_s18   ;;  %s27_s20 = sadd.s32 1, %s864_s15  ;;  %s876_s18 = sphi %s915_s18, %s15_s18   ;;  %s872_s17 = sphi %s913_s17, %s1122_s17   ;;  %s868_s16 = sphi %s911_s16, %s1121_s16   ;;  %s864_s15 = sphi %s909_s15, %s1120_s15   ;;  %s860_s14 = sphi %s907_s14, %s1119_s14   ;;  %s856_s13 = sphi %s905_s13, %s1118_s13   ;;  %s852_s12 = sphi %s903_s12, %s1117_s12   ;;  %s848_s11 = sphi %s901_s11, %s1116_s11   ;;  %s844_s10 = sphi %s899_s10, %s1115_s10   ;;  %s840_s9 = sphi %s897_s9, %s1114_s9  }
   0x7   : > { %p28_p0 = scmp.ge.s32.totalorder %s27_s20, 2  ;;  %s30_s21 = sadd.s32 1, %s868_s16 }
   0x8   : > { %s598_s22 = sadd.s32 4294967294, %s876_s18   ;;  %p111_p1 = scmp.ne.s32.totalorder %s848_s11, %s844_s10 }
   0x9   : > { %s1124_s20 = smov (%p28_p0, %s27_s20), 0  ;;  %s1126_s21 = smov (!%p28_p0, %s30_s21), %s868_s16 }
   0xa   : > { %s34_s23 = sadd.s32 1, %s872_s17  ;;  %p112_p2 = scmp.eq.s32.totalorder %s597_s19, 7 }
   0xb   : > { %p32_p3 = scmp.ge.s32.totalorder %s1126_s21, 2  ;;  %p117_p4 = scmp.ne.s32.totalorder %s844_s10, %s840_s9 }
   0xc   : > { %p959_p5 = por %p112_p2, %p111_p1  ;;  %p118_p6 = scmp.eq.s32.totalorder %s598_s22, 7 }
   0xd   : > { %s1128_s21 = smov (%p32_p3, %s1126_s21), 0  ;;  %s1130_s23 = smov (!%p32_p3, %s34_s23), %s872_s17 }
   0xe   : > { %1109 = sst [smem:[#allocation5_spill]] %s1128_s21  ;;  %p966_p7 = por %p118_p6, %p117_p4 }
   0xf   : > { %p36_p8 = scmp.ge.s32.totalorder %s1130_s23, 2  ;;  %p601_p9 = scmp.ge.s32.totalorder %s876_s18, 1 }
  0x10   : > { %s95_s26 = ssub.s32 %s868_s16, %s1128_s21  ;;  %p158_p10 = scmp.lt.s32.totalorder %s876_s18, 9 }
  0x11   : > { %s1132_s23 = smov (%p36_p8, %s1130_s23), 0  ;;  %s97_s27 = ssub.s32 %s864_s15, %s1124_s20 }
  0x12   : > { %1111 = sst [smem:[#allocation6_spill]] %s1132_s23  ;;  %p159_p11 = pnand %p601_p9, %p158_p10 }
  0x13   : > { %s94_s28 = ssub.s32 %s872_s17, %s1132_s23  ;;  %s101_s3 = sadd.s32 1, %s848_s11 }
  0x14   : > { %s96_s29 = sor.u32 %s95_s26, %s94_s28  ;;  %162 = sbr.rel (%p159_p11) target bundleno = 429 (0x1ad), region = 28 }
  0x15   : > { %s98_s30 = sor.u32 %s97_s27, %s96_s29  ;;  %p191_p13 = scmp.lt.s32.totalorder (!%p159_p11), %s860_s14, 1 }
  0x16   : > { %p99_p12 = scmp.eq.s32.totalorder %s98_s30, 0  ;;  %p193_p0 = scmp.lt.s32.totalorder (!%p159_p11), %s856_s13, 1 }
  0x17   : > { %p201_p1 = scmp.lt.s32.totalorder (!%p159_p11), %s852_s12, 1 }
  0x18   : > { %s982_s4 = scalar_select %p99_p12, %s848_s11, %s101_s3  }
  0x19   : > { %s192_s5 = scalar_select %p191_p13, %s860_s14, 1  ;;  %vm291_vm0 = vcmask 1044480   ;;  %vm242_vm1 = vcmask 39936  }
  0x1a   : > { %s194_s6 = scalar_select %p193_p0, %s856_s13, 1 }
  0x1b   : > { %s603_s7 = sshll.u32 %s192_s5, 1 }
  0x1c   : > { %s196_s8 = sadd.s32 %s603_s7, %s194_s6  ;;  %s631_s6 = sshll.u32 %s856_s13, 5 }
  0x1d   : > { %s604_s19 = sshll.u32 %s196_s8, 3  ;;  %s627_s8 = sshll.u32 %s860_s14, 6 }
  0x1e   : > { %s198_s27 = scalar_lea.vmem %s1103_s0, %s604_s19 }
  0x1f   : > { %s202_s28 = scalar_select %p201_p1, %s852_s12, 1  ;;  %v208_v0 = vld [vmem:[%s198_s27] sm:$0x1f] }
  0x20   : > { %210 = vxpose.xlu0.b32.start.end [1/1] (short) %v208_v0, 128 }
  0x21   : > { %s204_s29 = sadd.s32 %s603_s7, %s202_s28  ;;  %s485_s7 = sadd.s32 %s852_s12, %s631_s6 }
  0x22   : > { %s606_s30 = sshll.u32 %s204_s29, 3  ;;  %s487_s19 = sadd.s32 %s627_s8, %s485_s7 }
  0x23   : > { %s206_s21 = scalar_lea.vmem %s1104_s1, %s606_s30  ;;  %s628_s22 = sshll.u32 %s487_s19, 7 }
  0x24   : > { %v209_v1 = vld [vmem:[%s206_s21] sm:$0x1f]  ;;  %s188_s21 = sand.u32 1, %s844_s10   ;;  %s1038_s13 = scalar_lea.hbm %s1105_s2, %s628_s22 }
  0x25   : > { %649 = vmatprep.subr.msk.mxu0 %vm291_vm0, %v209_v1  ;;  %675 = vmatprep.subr.msk.mxu1 %vm291_vm0, %v209_v1  ;;  %s602_s23 = sshll.u32 %s188_s21, 7  ;;  %s1046_s12 = scalar_lea.sflag [#allocation3], %s188_s21 }
  0x26   : > { %650 = vmatpush3.msk.msra.mxu0 %vm291_vm0, %v209_v1  ;;  %676 = vmatpush3.msk.msra.mxu1 %vm291_vm0, %v209_v1  ;;  %s1015_s5 = scalar_lea.vmem [#allocation2], %s602_s23  ;;  %s878_s29 = smov [#allocation2]  }
  0x27   : > { %s490_s26 = sshll.u32 %s1015_s5, 4  ;;  %s772_s30 = sshll.u32 %s878_s29, 4  ;;  %s1040_s26 = int_to_ptr.vmem [resolvable:$true] %s490_s26  ;;  %s773_s30 = int_to_ptr.vmem [resolvable:$false] %s772_s30 }
  0x28   : > { %s768_s14 = scalar_lea.vmem %s1040_s26, 2048  ;;  %s774_s3 = scalar_lea.vmem %s773_s30, 4096 }
  0x29   : > { %p769_p2 = scmp.ne.s32.totalorder %s1040_s26, %s768_s14  ;;  %p775_p6 = scmp.lt.s32.totalorder %s1040_s26, %s773_s30 }
  0x2a   : > { %p776_p8 = scmp.lt.s32.totalorder %s774_s3, %s768_s14 }
  0x2b   : > { %p770_p3 = pnand %p769_p2, %p959_p5 }
  0x2c   : > { %p777_p9 = por %p776_p8, %p775_p6 }
  0x2d   : > { %p771_p4 = pneg %p770_p3 }
  0x2f   : > { %p778_p10 = pnand %p777_p9, %p771_p4 }
  0x9c   : > { %v226_v2 = vpop.trf.xlu0 }
  0x9d   : > { %651 = vmatprep.mubr.msk.f32.mxu0 %vm242_vm1, %v226_v2 }
  0xa0   : > { %v227_v3 = vpop.trf.xlu0 }
  0xa1   : > { %652 = vmatmul.mubr.msk.f32.vlgmr.msra.gmra.mxu0 %vm242_vm1, %v227_v3 }
  0xa4   : > { %v228_v4 = vpop.trf.xlu0 }
  0xa5   : > { %654 = vmatprep.mubr.msk.f32.mxu0 %vm242_vm1, %v228_v4 }
  0xa8   : > { %v229_v5 = vpop.trf.xlu0 }
  0xa9   : > { %655 = vmatmul.mubr.msk.f32.gmra.mxu0 %vm242_vm1, %v229_v5 }
  0xac   : > { %v230_v6 = vpop.trf.xlu0 }
  0xad   : > { %657 = vmatprep.mubr.msk.f32.mxu0 %vm242_vm1, %v230_v6 }
  0xb0   : > { %v231_v7 = vpop.trf.xlu0 }
  0xb1   : > { %658 = vmatmul.mubr.msk.f32.gmra.mxu0 %vm242_vm1, %v231_v7 }
  0xb4   : > { %v232_v8 = vpop.trf.xlu0 }
  0xb5   : > { %660 = vmatprep.mubr.msk.f32.mxu0 %vm242_vm1, %v232_v8 }
  0xb8   : > { %v233_v9 = vpop.trf.xlu0 }
  0xb9   : > { %661 = vmatmul.mubr.msk.f32.gmra.mxu0 %vm242_vm1, %v233_v9 }
  0xbc   : > { %v234_v10 = vpop.trf.xlu0 }
  0xbd   : > { %663 = vmatprep.mubr.msk.f32.mxu1 %vm242_vm1, %v234_v10 }
  0xc0   : > { %v235_v11 = vpop.trf.xlu0 }
  0xc1   : > { %664 = vmatmul.mubr.msk.f32.vlgmr.msra.gmra.mxu1 %vm242_vm1, %v235_v11 }
  0xc4   : > { %v236_v12 = vpop.trf.xlu0 }
  0xc5   : > { %666 = vmatprep.mubr.msk.f32.mxu1 %vm242_vm1, %v236_v12 }
  0xc8   : > { %v237_v13 = vpop.trf.xlu0 }
  0xc9   : > { %667 = vmatmul.mubr.msk.f32.gmra.mxu1 %vm242_vm1, %v237_v13 }
  0xcc   : > { %v238_v14 = vpop.trf.xlu0 }
  0xcd   : > { %669 = vmatprep.mubr.msk.f32.mxu1 %vm242_vm1, %v238_v14 }
  0xd0   : > { %v239_v15 = vpop.trf.xlu0 }
  0xd1   : > { %670 = vmatmul.mubr.msk.f32.gmra.mxu1 %vm242_vm1, %v239_v15 }
  0xd4   : > { %v240_v16 = vpop.trf.xlu0 }
  0xd5   : > { %672 = vmatprep.mubr.msk.f32.mxu1 %vm242_vm1, %v240_v16 }
  0xd8   : > { %v241_v17 = vpop.trf.xlu0 }
  0xd9   : > { %673 = vmatmul.mubr.msk.f32.gmra.mxu1 %vm242_vm1, %v241_v17 }
 0x161   : > { %v653_v18 = vpop.f32.mrf.mxu0 }
 0x162   : > { %v441_v19 = vmax.f32 %v653_v18, 0.0 }
 0x163   : > { %v361_v20 = vpop.f32.mrf.mxu0 }
 0x164   : > { %457 = vst [vmem:[%s1015_s5 + $0x8] sm:$0xff] %v441_v19  ;;  %v440_v21 = vmax.f32 %v361_v20, 0.0 }
 0x166   : > { %456 = vst [vmem:[%s1015_s5] sm:$0xff] %v440_v21 }
 0x169   : > { %v656_v22 = vpop.f32.mrf.mxu0 }
 0x16a   : > { %v443_v23 = vmax.f32 %v656_v22, 0.0 }
 0x16b   : > { %v371_v24 = vpop.f32.mrf.mxu0 }
 0x16c   : > { %459 = vst [vmem:[%s1015_s5 + $0x18] sm:$0xff] %v443_v23  ;;  %v442_v25 = vmax.f32 %v371_v24, 0.0 }
 0x16e   : > { %458 = vst [vmem:[%s1015_s5 + $0x10] sm:$0xff] %v442_v25 }
 0x171   : > { %v659_v26 = vpop.f32.mrf.mxu0 }
 0x172   : > { %v445_v27 = vmax.f32 %v659_v26, 0.0 }
 0x173   : > { %v381_v28 = vpop.f32.mrf.mxu0 }
 0x174   : > { %461 = vst [vmem:[%s1015_s5 + $0x28] sm:$0xff] %v445_v27  ;;  %v444_v29 = vmax.f32 %v381_v28, 0.0 }
 0x176   : > { %460 = vst [vmem:[%s1015_s5 + $0x20] sm:$0xff] %v444_v29 }
 0x179   : > { %v662_v30 = vpop.f32.mrf.mxu0 }
 0x17a   : > { %v447_v31 = vmax.f32 %v662_v30, 0.0 }
 0x17b   : > { %v391_v32 = vpop.f32.mrf.mxu0 }
 0x17c   : > { %463 = vst [vmem:[%s1015_s5 + $0x38] sm:$0xff] %v447_v31  ;;  %v446_v33 = vmax.f32 %v391_v32, 0.0 }
 0x17e   : > { %462 = vst [vmem:[%s1015_s5 + $0x30] sm:$0xff] %v446_v33 }
 0x181   : > { %v665_v34 = vpop.f32.mrf.mxu1 }
 0x182   : > { %v449_v35 = vmax.f32 %v665_v34, 0.0 }
 0x183   : > { %v401_v36 = vpop.f32.mrf.mxu1 }
 0x184   : > { %465 = vst [vmem:[%s1015_s5 + $0x48] sm:$0xff] %v449_v35  ;;  %v448_v37 = vmax.f32 %v401_v36, 0.0 }
 0x186   : > { %464 = vst [vmem:[%s1015_s5 + $0x40] sm:$0xff] %v448_v37 }
 0x189   : > { %v668_v38 = vpop.f32.mrf.mxu1 }
 0x18a   : > { %v451_v39 = vmax.f32 %v668_v38, 0.0 }
 0x18b   : > { %v411_v40 = vpop.f32.mrf.mxu1 }
 0x18c   : > { %467 = vst [vmem:[%s1015_s5 + $0x58] sm:$0xff] %v451_v39  ;;  %v450_v41 = vmax.f32 %v411_v40, 0.0 }
 0x18e   : > { %466 = vst [vmem:[%s1015_s5 + $0x50] sm:$0xff] %v450_v41 }
 0x191   : > { %v671_v42 = vpop.f32.mrf.mxu1 }
 0x192   : > { %v453_v43 = vmax.f32 %v671_v42, 0.0 }
 0x193   : > { %v421_v44 = vpop.f32.mrf.mxu1 }
 0x194   : > { %469 = vst [vmem:[%s1015_s5 + $0x68] sm:$0xff] %v453_v43  ;;  %v452_v45 = vmax.f32 %v421_v44, 0.0 }
 0x196   : > { %468 = vst [vmem:[%s1015_s5 + $0x60] sm:$0xff] %v452_v45 }
 0x199   : > { %v674_v46 = vpop.f32.mrf.mxu1 }
 0x19a   : > { %v455_v47 = vmax.f32 %v674_v46, 0.0 }
 0x19b   : > { %v431_v48 = vpop.f32.mrf.mxu1 }
 0x19c   : > { %471 = vst [vmem:[%s1015_s5 + $0x78] sm:$0xff] %v455_v47  ;;  %v454_v49 = vmax.f32 %v431_v48, 0.0 }
 0x19e   : > { %470 = vst [vmem:[%s1015_s5 + $0x70] sm:$0xff] %v454_v49 }
 0x19f   : > { %781 = shalt.err (!%p778_p10)
}
 0x1a0   : > { %s782_s21 = scalar_lea.hbm %s1038_s13, 2048  ;;  %s786_s6 = scalar_lea.hbm %s1105_s2, 16384 }
 0x1a1   : > { %p783_p11 = scmp.ne.s32.totalorder %s1038_s13, %s782_s21  ;;  %p787_p0 = scmp.lt.s32.totalorder %s1038_s13, %s1105_s2 }
 0x1a2   : > { %p788_p1 = scmp.lt.s32.totalorder %s786_s6, %s782_s21 }
 0x1a3   : > { %p784_p12 = pnand %p783_p11, %p959_p5 }
 0x1a4   : > { %p789_p2 = por %p788_p1, %p787_p0 }
 0x1a5   : > { %p785_p13 = pneg %p784_p12 }
 0x1a7   : > { %p790_p3 = pnand %p789_p2, %p785_p13 }
 0x1a9   : > { %793 = shalt.err (!%p790_p3)
}
 0x1aa   : > { %s879_s19 = smov 128   ;;  %s880_s22 = smov 256  }
 0x1ab   : > { %s881_s27 = smov 8  }
 0x1ac   : > { %677 = dma.vmem_to_hbm [thread:$0]  (%p959_p5), %s1040_s26, 2048, %s1038_s13, %s1046_s12, %s879_s19, %s880_s22, %s881_s27  }
 0x1ad PF: > { %p683_p4 = scmp.ge.s32.totalorder %s876_s18, 2  ;;  %s505_s28 = sand.u32 1, %s840_s9  }
 0x1ae   : > { %s506_s14 = scalar_lea.sflag [#allocation3], %s505_s28 }
 0x1af   : > { %p680_p6 = pnand %p683_p4, %p966_p7 }
 0x1b1   : > { %p681_p8 = pneg %p680_p6 }
 0x1b3   : > { %835 = dma.done.wait (%p681_p8), %s506_s14, 2048  }
 0x1b4   : > { %837 = vsyncadd (%p681_p8), %s506_s14, 4294965248  ;;  %s15_s18 = sadd.s32 1, %s876_s18   ;;  %s1112_s24 = sld [smem:[#allocation5_spill]] }
 0x1b5   : > { %p12_p9 = scmp.ge.s32.totalorder %s15_s18, 10   ;;  %s1113_s26 = sld [smem:[#allocation6_spill]] }
 0x1b6   : > { %s1114_s9 = smov %s844_s10  ;;  %s1115_s10 = smov %s848_s11 }
 0x1b7   : > { %s1116_s11 = smov %s982_s4  ;;  %s1117_s12 = smov %s864_s15 }
 0x1b8   : > { %s1118_s13 = smov %s868_s16  ;;  %s1119_s14 = smov %s872_s17 }
 0x1b9   : > { %s1120_s15 = smov %s1124_s20  ;;  %14 = sbr.rel (!%p12_p9) target bundleno = 6 (0x6), region = 66 }
 0x1ba   : > { %s1121_s16 = smov %s1112_s24 }
 0x1bb   : > { %s1122_s17 = smov %s1113_s26 }
 0x1be   :  { %511 = vsyncpa [#allocation3], 1 }
 0x1bf   :  { %513 = vsyncpa [#allocation3 + $0x1], 1 }

</bundles_post_ra>
